<compile_context>
chip_gen: v7x
topology: tpu7x:2x2x1
jax: 0.10.0
libtpu: 0.0.40
codegen_flags: <defaults>
</compile_context>

<pallas_src>
import functools

import jax
import jax.numpy as jnp
from jax.experimental import pallas as pl
from jax.experimental.pallas import tpu as pltpu

OUT_W = 128  # lane-dense packed output width (probs | value | entropy | pad)


# --------------------------------------------------------------------------
# Fused kernel: one batch element per grid step ("parallel" axis).
# --------------------------------------------------------------------------
def actor_critic_kernel(xn_ref, x_ref, state_ref, mask_ref,
                        wea_ref, web_ref, be_ref, ws_ref, bs_ref,
                        w1_ref, b1_ref, wa2f_ref, ba2p_ref,
                        out_ref, *, n, k, a):
    # ---- shared GCN trunk (EdgeConv with split weights) ----
    xi = x_ref[0]                                   # [N, F]   self features
    xn = xn_ref[0]                                  # [K*N, F] gathered neighbors

    # edge(x_i, x_j) @ we  ==  x_i @ (we_self - we_diff)  +  x_j @ we_diff
    h_self = (jnp.dot(xi, wea_ref[...], preferred_element_type=jnp.float32)
              + be_ref[...])                        # [N, E]   (bias added once)
    h_nb = jnp.dot(xn, web_ref[...],
                   preferred_element_type=jnp.float32)          # [K*N, E]

    # max over K neighbours via aligned row slices (rows ordered (k, n));
    # relu and the self term commute with the max, so apply them once.
    m = h_nb[0:n]
    for kk in range(1, k):
        m = jnp.maximum(m, h_nb[kk * n:(kk + 1) * n])
    node = jnp.maximum(h_self + m, 0.0)             # [N, E]

    # global max + mean pooling -> [1, 2E]  (vectorized sublane reductions)
    pooled = jnp.concatenate(
        [jnp.max(node, axis=0, keepdims=True),
         jnp.sum(node, axis=0, keepdims=True) * (1.0 / n)], axis=-1)

    feat = (pooled
            + jnp.dot(state_ref[0], ws_ref[...],
                      preferred_element_type=jnp.float32)
            + bs_ref[...])                          # [1, 2E]

    # ---- fused actor/critic first layer ----
    h1 = jnp.maximum(
        jnp.dot(feat, w1_ref[...], preferred_element_type=jnp.float32)
        + b1_ref[...], 0.0)                         # [1, Ha+Hc]

    # ---- single [H,128] head matmul: actor logits on lanes [0,A),
    #      critic value folded into lane A (its weight column / bias lane) ----
    logits_raw = (jnp.dot(h1, wa2f_ref[...], preferred_element_type=jnp.float32)
                  + ba2p_ref[...])                  # [1, 128]

    # ---- masked softmax (value/pad lanes have mask 0 -> underflow to prob 0)
    mk = mask_ref[0]                                # [1, 128]
    logits = jnp.where(mk > 0, logits_raw, -1e9)
    mx = jnp.max(logits, axis=-1, keepdims=True)
    ex = jnp.exp(logits - mx)
    s = jnp.sum(ex, axis=-1, keepdims=True)
    r = pl.reciprocal(s, approx=True)               # EUP slot
    r = r * (2.0 - s * r)                           # one Newton step (f32 acc)
    probs = ex * r                                  # [1, 128]
    ent = -jnp.sum(probs * jnp.log(probs + 1e-12),
                   axis=-1, keepdims=True)          # [1, 1]

    # ---- pack probs / value / entropy into one lane-dense [1, 128] slab ----
    lane = jax.lax.broadcasted_iota(jnp.int32, (1, out_ref.shape[-1]), 1)
    out = jnp.where(lane == a, logits_raw, probs)   # lane A already holds value
    out = jnp.where(lane == a + 1, ent, out)
    out_ref[0] = out


# --------------------------------------------------------------------------
# Wrapper
# --------------------------------------------------------------------------
def actor_critic_forward(x, state, mask, fp, k):
    """x: [B,N,F], state: [B,S], mask: [B,A]; returns (probs, value, entropy)."""
    B, N, F = x.shape
    S = state.shape[1]
    A = mask.shape[1]
    E = fp["wea"].shape[1]
    H = fp["w1"].shape[1]          # Ha + Hc
    assert A + 2 <= OUT_W, "packed output needs lanes for value and entropy"

    # ---- glue: knn graph (Gram-matrix distances) + neighbour gather ----
    sq = jnp.sum(x * x, axis=-1)                               # [B, N]
    gram = jnp.einsum("bnf,bmf->bnm", x, x)                    # [B, N, N]
    d = sq[:, :, None] + sq[:, None, :] - 2.0 * gram
    d = d + jnp.eye(N, dtype=x.dtype)[None] * 1e9              # exclude self
    _, idx = jax.lax.top_k(-d, k)                              # [B, N, K]
    # gather neighbors directly in (b, k, n) row order -> no big transpose,
    # and only F (not 2F) columns per row reach HBM.
    idx_kn = jnp.transpose(idx, (0, 2, 1))                     # [B, K, N] (tiny)
    xn = jax.vmap(lambda xb, ib: xb[ib])(x, idx_kn)            # [B, K, N, F]
    xn = xn.reshape(B, k * N, F)

    mask128 = jnp.pad(mask.astype(jnp.float32), ((0, 0), (0, OUT_W - A)))
    state3 = state[:, None, :]                                 # [B, 1, S]
    mask3 = mask128[:, None, :]                                # [B, 1, 128]

    const2 = lambda r, c: pl.BlockSpec((r, c), lambda b: (0, 0))
    out = pl.pallas_call(
        functools.partial(actor_critic_kernel, n=N, k=k, a=A),
        out_shape=jax.ShapeDtypeStruct((B, 1, OUT_W), jnp.float32),
        grid=(B,),
        in_specs=[
            pl.BlockSpec((1, k * N, F), lambda b: (b, 0, 0)),   # xn (neighbors)
            pl.BlockSpec((1, N, F), lambda b: (b, 0, 0)),       # x  (self)
            pl.BlockSpec((1, 1, S), lambda b: (b, 0, 0)),       # state
            pl.BlockSpec((1, 1, OUT_W), lambda b: (b, 0, 0)),   # mask (padded)
            const2(F, E), const2(F, E), const2(1, E),           # wea, web, be
            const2(S, 2 * E), const2(1, 2 * E),                 # ws, bs
            const2(2 * E, H), const2(1, H),                     # w1, b1
            const2(H, OUT_W), const2(1, OUT_W),                 # wa2f, ba2p
        ],
        out_specs=pl.BlockSpec((1, 1, OUT_W), lambda b: (b, 0, 0)),
        compiler_params=pltpu.CompilerParams(
            dimension_semantics=("parallel",),
            vmem_limit_bytes=32 * 1024 * 1024),
    )(xn, x, state3, mask3,
      fp["wea"], fp["web"], fp["be"], fp["ws"], fp["bs"],
      fp["w1"], fp["b1"], fp["wa2f"], fp["ba2p"])

    probs = out[:, 0, :A]
    value = out[:, 0, A]
    entropy = out[:, 0, A + 1]
    return probs, value, entropy


def actor_critic_evaluate(x, state, mask, fused_params, k):
    """Mirrors ActorCritic.evaluate / act_test (deterministic argmax action).

    Returns (state_values, action2, action2_logprob, dist2_entropy, probs).
    """
    probs, value, entropy = actor_critic_forward(x, state, mask, fused_params, k)
    # TODO(synk): Categorical.sample() in `act` is stochastic; the deterministic
    # argmax (act_test) path is implemented, log_prob/entropy come from kernel probs.
    action2 = jnp.argmax(probs, axis=-1)
    logprob = jnp.log(
        jnp.take_along_axis(probs, action2[:, None], axis=-1)[:, 0] + 1e-12)
    return value, action2, logprob, entropy, probs


# --------------------------------------------------------------------------
# Parameter construction (deterministic, synthetic) + one-time fusion/padding
# --------------------------------------------------------------------------
def make_params(key, F, E, S, Ha, Hc, A):
    ks = jax.random.split(key, 6)
    return {
        # shared EdgeConv + state projection
        "we": jax.random.normal(ks[0], (2 * F, E), jnp.float32) * 0.1,
        "be": jnp.zeros((1, E), jnp.float32),
        "ws": jax.random.normal(ks[1], (S, 2 * E), jnp.float32) * 0.1,
        "bs": jnp.zeros((1, 2 * E), jnp.float32),
        # actor2 arm
        "wa1": jax.random.normal(ks[2], (2 * E, Ha), jnp.float32) * 0.1,
        "ba1": jnp.zeros((1, Ha), jnp.float32),
        "wa2": jax.random.normal(ks[3], (Ha, A), jnp.float32) * 0.1,
        "ba2": jnp.zeros((1, A), jnp.float32),
        # critic arm
        "wc1": jax.random.normal(ks[4], (2 * E, Hc), jnp.float32) * 0.1,
        "bc1": jnp.zeros((1, Hc), jnp.float32),
        "wc2": jax.random.normal(ks[5], (Hc, 1), jnp.float32) * 0.1,
        "bc2": jnp.zeros((1, 1), jnp.float32),
    }


def fuse_params(p, A, out_w=OUT_W):
    """One-time weight fusion / lane padding for the fused kernel."""
    F = p["we"].shape[0] // 2
    Ha = p["wa1"].shape[1]
    Hc = p["wc1"].shape[1]
    assert A + 2 <= out_w

    # split EdgeConv weight: edge(x_i, x_j) = [x_i, x_j - x_i]
    #   => x_i @ (we[:F] - we[F:]) + x_j @ we[F:]
    we_self, we_diff = p["we"][:F], p["we"][F:]

    # actor layer 2 over the full h1 (zero rows for the critic half),
    # padded to 128 output lanes; critic layer 2 folded into lane A.
    wa2f = jnp.pad(
        jnp.concatenate([p["wa2"], jnp.zeros((Hc, A), jnp.float32)], axis=0),
        ((0, 0), (0, out_w - A)))                                   # [H, 128]
    wc2_col = jnp.concatenate([jnp.zeros((Ha, 1), jnp.float32), p["wc2"]],
                              axis=0)                               # [H, 1]
    wa2f = wa2f.at[:, A:A + 1].set(wc2_col)
    ba2p = jnp.pad(p["ba2"], ((0, 0), (0, out_w - A)))              # [1, 128]
    ba2p = ba2p.at[:, A].set(p["bc2"][0, 0])

    return {
        "wea": we_self - we_diff, "web": we_diff, "be": p["be"],
        "ws": p["ws"], "bs": p["bs"],
        # fused actor/critic layer 1
        "w1": jnp.concatenate([p["wa1"], p["wc1"]], axis=1),        # [2E, Ha+Hc]
        "b1": jnp.concatenate([p["ba1"], p["bc1"]], axis=1),        # [1, Ha+Hc]
        "wa2f": wa2f, "ba2p": ba2p,
    }


# --------------------------------------------------------------------------
# Pure-JAX reference (canonical unfused forward) for correctness checking
# --------------------------------------------------------------------------
def reference_forward(x, state, mask, p, k):
    B, N, F = x.shape
    sq = jnp.sum(x * x, axis=-1)
    gram = jnp.einsum("bnf,bmf->bnm", x, x)
    d = sq[:, :, None] + sq[:, None, :] - 2.0 * gram
    d = d + jnp.eye(N, dtype=x.dtype)[None] * 1e9
    _, idx = jax.lax.top_k(-d, k)                                   # [B, N, K]
    xn = jax.vmap(lambda xb, ib: xb[ib])(x, idx)                    # [B, N, K, F]
    xi = jnp.broadcast_to(x[:, :, None, :], (B, N, k, F))
    e = jnp.concatenate([xi, xn - xi], axis=-1)                     # [B, N, K, 2F]
    h = jnp.maximum(jnp.einsum("bnkf,fe->bnke", e, p["we"]) + p["be"][0], 0.0)
    node = jnp.max(h, axis=2)                                       # [B, N, E]
    pooled = jnp.concatenate([jnp.max(node, 1), jnp.mean(node, 1)], axis=-1)
    feat = pooled + state @ p["ws"] + p["bs"]
    ha = jnp.maximum(feat @ p["wa1"] + p["ba1"], 0.0)
    logits = ha @ p["wa2"] + p["ba2"]
    logits = jnp.where(mask > 0, logits, -1e9)
    probs = jax.nn.softmax(logits, axis=-1)
    ent = -jnp.sum(probs * jnp.log(probs + 1e-12), axis=-1)
    hc = jnp.maximum(feat @ p["wc1"] + p["bc1"], 0.0)
    value = (hc @ p["wc2"] + p["bc2"])[:, 0]
    return probs, value, ent


if __name__ == "__main__":
    # Small shapes consistent with the module's constructor arguments.
    B, N = 2, 16            # batch, graph nodes
    F = 4                   # feature_dims
    K = 4                   # k (knn neighbors)
    E = 16                  # emb_dims  -> shared feature is 2E = 32
    S = 8                   # state_dim
    A = 8                   # action2_dim
    Ha, Hc = 32, 32         # actor_arm_dim_list / critic_arm_dim_list

    root = jax.random.PRNGKey(0)
    kx, ks, km, kp = jax.random.split(root, 4)

    x = jax.random.normal(kx, (B, N, F), jnp.float32)
    state = jax.random.normal(ks, (B, S), jnp.float32)
    mask = (jax.random.uniform(km, (B, A)) > 0.3).astype(jnp.float32)
    mask = mask.at[:, 0].set(1.0)   # guarantee at least one valid action

    params = make_params(kp, F, E, S, Ha, Hc, A)
    fused_params = fuse_params(params, A)

    values, action2, logprob, entropy, probs = jax.jit(
        functools.partial(actor_critic_evaluate, k=K)
    )(x, state, mask, fused_params)

    jax.block_until_ready((values, action2, logprob, entropy, probs))

    # sanity: probs are a valid masked categorical distribution
    assert probs.shape == (B, A)
    assert jnp.allclose(jnp.sum(probs, axis=-1), 1.0, atol=1e-5)
    assert jnp.all(probs * (1.0 - mask) < 1e-6)
    assert values.shape == (B,) and entropy.shape == (B,)

    # compare against the pure-JAX canonical forward
    rp, rv, rent = reference_forward(x, state, mask, params, K)
    assert jnp.allclose(probs, rp, atol=1e-3), "probs mismatch vs reference"
    assert jnp.allclose(values, rv, atol=1e-3), "value mismatch vs reference"
    assert jnp.allclose(entropy, rent, atol=1e-3), "entropy mismatch vs reference"

    print("KERNEL_OK")
</pallas_src>

<mosaic_0001>
module attributes {stable_mosaic.version = 11 : i64} {
  func.func @actor_critic_kernel(%arg0: i32, %arg1: memref<1x64x4xf32, #tpu.memory_space<vmem>>, %arg2: memref<1x16x4xf32, #tpu.memory_space<vmem>>, %arg3: memref<1x1x8xf32, #tpu.memory_space<vmem>>, %arg4: memref<1x1x128xf32, #tpu.memory_space<vmem>>, %arg5: memref<4x16xf32, #tpu.memory_space<vmem>>, %arg6: memref<4x16xf32, #tpu.memory_space<vmem>>, %arg7: memref<1x16xf32, #tpu.memory_space<vmem>>, %arg8: memref<8x32xf32, #tpu.memory_space<vmem>>, %arg9: memref<1x32xf32, #tpu.memory_space<vmem>>, %arg10: memref<32x64xf32, #tpu.memory_space<vmem>>, %arg11: memref<1x64xf32, #tpu.memory_space<vmem>>, %arg12: memref<64x128xf32, #tpu.memory_space<vmem>>, %arg13: memref<1x128xf32, #tpu.memory_space<vmem>>, %arg14: memref<1x1x128xf32, #tpu.memory_space<vmem>>) attributes {dimension_semantics = [#tpu.dimension_semantics<parallel>], iteration_bounds = array<i64: 2>, scalar_prefetch = 0 : i64, scratch_operands = 0 : i64, tpu.core_type = #tpu.core_type<tc>, window_params = [{transform_indices = @transform_0, window_bounds = array<i64: 1, 64, 4>}, {transform_indices = @transform_1, window_bounds = array<i64: 1, 16, 4>}, {transform_indices = @transform_2, window_bounds = array<i64: 1, 1, 8>}, {transform_indices = @transform_3, window_bounds = array<i64: 1, 1, 128>}, {pipeline_mode = #tpu.pipeline_mode<synchronous>, transform_indices = @transform_4, window_bounds = array<i64: 4, 16>}, {pipeline_mode = #tpu.pipeline_mode<synchronous>, transform_indices = @transform_5, window_bounds = array<i64: 4, 16>}, {pipeline_mode = #tpu.pipeline_mode<synchronous>, transform_indices = @transform_6, window_bounds = array<i64: 1, 16>}, {pipeline_mode = #tpu.pipeline_mode<synchronous>, transform_indices = @transform_7, window_bounds = array<i64: 8, 32>}, {pipeline_mode = #tpu.pipeline_mode<synchronous>, transform_indices = @transform_8, window_bounds = array<i64: 1, 32>}, {pipeline_mode = #tpu.pipeline_mode<synchronous>, transform_indices = @transform_9, window_bounds = array<i64: 32, 64>}, {pipeline_mode = #tpu.pipeline_mode<synchronous>, transform_indices = @transform_10, window_bounds = array<i64: 1, 64>}, {pipeline_mode = #tpu.pipeline_mode<synchronous>, transform_indices = @transform_11, window_bounds = array<i64: 64, 128>}, {pipeline_mode = #tpu.pipeline_mode<synchronous>, transform_indices = @transform_12, window_bounds = array<i64: 1, 128>}, {transform_indices = @transform_13, window_bounds = array<i64: 1, 1, 128>}]} {
    %c0 = arith.constant 0 : index
    %c0_0 = arith.constant 0 : index
    %c0_1 = arith.constant 0 : index
    %0 = vector.load %arg2[%c0, %c0_0, %c0_1] : memref<1x16x4xf32, #tpu.memory_space<vmem>>, vector<1x16x4xf32>
    %1 = vector.shape_cast %0 : vector<1x16x4xf32> to vector<16x4xf32>
    %c0_2 = arith.constant 0 : index
    %c0_3 = arith.constant 0 : index
    %c0_4 = arith.constant 0 : index
    %2 = vector.load %arg1[%c0_2, %c0_3, %c0_4] : memref<1x64x4xf32, #tpu.memory_space<vmem>>, vector<1x64x4xf32>
    %3 = vector.shape_cast %2 : vector<1x64x4xf32> to vector<64x4xf32>
    %c0_5 = arith.constant 0 : index
    %c0_6 = arith.constant 0 : index
    %4 = vector.load %arg5[%c0_5, %c0_6] : memref<4x16xf32, #tpu.memory_space<vmem>>, vector<4x16xf32>
    %cst = arith.constant dense<0.000000e+00> : vector<16x16xf32>
    %5 = tpu.matmul %1, %4, %cst {dimension_numbers = #tpu.dot_dimension_numbers<[1], [0], [0], [1], [0, 0, 1, 1], [], []>} : vector<16x4xf32>, vector<4x16xf32>, vector<16x16xf32> -> vector<16x16xf32>
    %c0_7 = arith.constant 0 : index
    %c0_8 = arith.constant 0 : index
    %6 = vector.load %arg7[%c0_7, %c0_8] : memref<1x16xf32, #tpu.memory_space<vmem>>, vector<1x16xf32>
    %7 = vector.broadcast %6 : vector<1x16xf32> to vector<16x16xf32>
    %8 = arith.addf %5, %7 : vector<16x16xf32>
    %c0_9 = arith.constant 0 : index
    %c0_10 = arith.constant 0 : index
    %9 = vector.load %arg6[%c0_9, %c0_10] : memref<4x16xf32, #tpu.memory_space<vmem>>, vector<4x16xf32>
    %cst_11 = arith.constant dense<0.000000e+00> : vector<64x16xf32>
    %10 = tpu.matmul %3, %9, %cst_11 {dimension_numbers = #tpu.dot_dimension_numbers<[1], [0], [0], [1], [0, 0, 1, 1], [], []>} : vector<64x4xf32>, vector<4x16xf32>, vector<64x16xf32> -> vector<64x16xf32>
    %11 = vector.extract_strided_slice %10 {offsets = [0, 0], sizes = [16, 16], strides = [1, 1]} : vector<64x16xf32> to vector<16x16xf32>
    %12 = vector.extract_strided_slice %10 {offsets = [16, 0], sizes = [16, 16], strides = [1, 1]} : vector<64x16xf32> to vector<16x16xf32>
    %13 = arith.maximumf %11, %12 : vector<16x16xf32>
    %14 = vector.extract_strided_slice %10 {offsets = [32, 0], sizes = [16, 16], strides = [1, 1]} : vector<64x16xf32> to vector<16x16xf32>
    %15 = arith.maximumf %13, %14 : vector<16x16xf32>
    %16 = vector.extract_strided_slice %10 {offsets = [48, 0], sizes = [16, 16], strides = [1, 1]} : vector<64x16xf32> to vector<16x16xf32>
    %17 = arith.maximumf %15, %16 : vector<16x16xf32>
    %18 = arith.addf %8, %17 : vector<16x16xf32>
    %cst_12 = arith.constant 0.000000e+00 : f32
    %19 = vector.broadcast %cst_12 : f32 to vector<16x16xf32>
    %20 = arith.maximumf %18, %19 : vector<16x16xf32>
    %cst_13 = arith.constant dense<0xFF800000> : vector<16xf32>
    %21 = vector.multi_reduction <maximumf>, %20, %cst_13 [0] : vector<16x16xf32> to vector<16xf32>
    %22 = vector.shape_cast %21 : vector<16xf32> to vector<1x16xf32>
    %cst_14 = arith.constant dense<0.000000e+00> : vector<16xf32>
    %23 = vector.multi_reduction <add>, %20, %cst_14 [0] : vector<16x16xf32> to vector<16xf32>
    %24 = vector.shape_cast %23 : vector<16xf32> to vector<1x16xf32>
    %cst_15 = arith.constant 6.250000e-02 : f32
    %25 = vector.broadcast %cst_15 : f32 to vector<1x16xf32>
    %26 = arith.mulf %24, %25 : vector<1x16xf32>
    %27 = tpu.concatenate %22, %26 in 1 : vector<1x16xf32>, vector<1x16xf32> -> vector<1x32xf32>
    %c0_16 = arith.constant 0 : index
    %c0_17 = arith.constant 0 : index
    %c0_18 = arith.constant 0 : index
    %28 = vector.load %arg3[%c0_16, %c0_17, %c0_18] : memref<1x1x8xf32, #tpu.memory_space<vmem>>, vector<1x1x8xf32>
    %29 = vector.shape_cast %28 : vector<1x1x8xf32> to vector<1x8xf32>
    %c0_19 = arith.constant 0 : index
    %c0_20 = arith.constant 0 : index
    %30 = vector.load %arg8[%c0_19, %c0_20] : memref<8x32xf32, #tpu.memory_space<vmem>>, vector<8x32xf32>
    %cst_21 = arith.constant dense<0.000000e+00> : vector<1x32xf32>
    %31 = tpu.matmul %29, %30, %cst_21 {dimension_numbers = #tpu.dot_dimension_numbers<[1], [0], [0], [1], [0, 0, 1, 1], [], []>} : vector<1x8xf32>, vector<8x32xf32>, vector<1x32xf32> -> vector<1x32xf32>
    %32 = arith.addf %27, %31 : vector<1x32xf32>
    %c0_22 = arith.constant 0 : index
    %c0_23 = arith.constant 0 : index
    %33 = vector.load %arg9[%c0_22, %c0_23] : memref<1x32xf32, #tpu.memory_space<vmem>>, vector<1x32xf32>
    %34 = arith.addf %32, %33 : vector<1x32xf32>
    %c0_24 = arith.constant 0 : index
    %c0_25 = arith.constant 0 : index
    %35 = vector.load %arg10[%c0_24, %c0_25] : memref<32x64xf32, #tpu.memory_space<vmem>>, vector<32x64xf32>
    %cst_26 = arith.constant dense<0.000000e+00> : vector<1x64xf32>
    %36 = tpu.matmul %34, %35, %cst_26 {dimension_numbers = #tpu.dot_dimension_numbers<[1], [0], [0], [1], [0, 0, 1, 1], [], []>} : vector<1x32xf32>, vector<32x64xf32>, vector<1x64xf32> -> vector<1x64xf32>
    %c0_27 = arith.constant 0 : index
    %c0_28 = arith.constant 0 : index
    %37 = vector.load %arg11[%c0_27, %c0_28] : memref<1x64xf32, #tpu.memory_space<vmem>>, vector<1x64xf32>
    %38 = arith.addf %36, %37 : vector<1x64xf32>
    %cst_29 = arith.constant 0.000000e+00 : f32
    %39 = vector.broadcast %cst_29 : f32 to vector<1x64xf32>
    %40 = arith.maximumf %38, %39 : vector<1x64xf32>
    %c0_30 = arith.constant 0 : index
    %c0_31 = arith.constant 0 : index
    %41 = vector.load %arg12[%c0_30, %c0_31] : memref<64x128xf32, #tpu.memory_space<vmem>>, vector<64x128xf32>
    %cst_32 = arith.constant dense<0.000000e+00> : vector<1x128xf32>
    %42 = tpu.matmul %40, %41, %cst_32 {dimension_numbers = #tpu.dot_dimension_numbers<[1], [0], [0], [1], [0, 0, 1, 1], [], []>} : vector<1x64xf32>, vector<64x128xf32>, vector<1x128xf32> -> vector<1x128xf32>
    %c0_33 = arith.constant 0 : index
    %c0_34 = arith.constant 0 : index
    %43 = vector.load %arg13[%c0_33, %c0_34] : memref<1x128xf32, #tpu.memory_space<vmem>>, vector<1x128xf32>
    %44 = arith.addf %42, %43 : vector<1x128xf32>
    %c0_35 = arith.constant 0 : index
    %c0_36 = arith.constant 0 : index
    %c0_37 = arith.constant 0 : index
    %45 = vector.load %arg4[%c0_35, %c0_36, %c0_37] : memref<1x1x128xf32, #tpu.memory_space<vmem>>, vector<1x1x128xf32>
    %46 = vector.shape_cast %45 : vector<1x1x128xf32> to vector<1x128xf32>
    %cst_38 = arith.constant 0.000000e+00 : f32
    %47 = vector.broadcast %cst_38 : f32 to vector<1x128xf32>
    %48 = arith.cmpf ogt, %46, %47 : vector<1x128xf32>
    %cst_39 = arith.constant -1.000000e+09 : f32
    %49 = vector.broadcast %cst_39 : f32 to vector<1x128xf32>
    %50 = arith.select %48, %44, %49 : vector<1x128xi1>, vector<1x128xf32>
    %cst_40 = arith.constant dense<0xFF800000> : vector<1xf32>
    %51 = vector.multi_reduction <maximumf>, %50, %cst_40 [1] : vector<1x128xf32> to vector<1xf32>
    %52 = vector.shape_cast %51 : vector<1xf32> to vector<1x1xf32>
    %53 = vector.broadcast %52 : vector<1x1xf32> to vector<1x128xf32>
    %54 = arith.subf %50, %53 : vector<1x128xf32>
    %55 = math.exp %54 : vector<1x128xf32>
    %cst_41 = arith.constant dense<0.000000e+00> : vector<1xf32>
    %56 = vector.multi_reduction <add>, %55, %cst_41 [1] : vector<1x128xf32> to vector<1xf32>
    %57 = vector.shape_cast %56 : vector<1xf32> to vector<1x1xf32>
    %58 = tpu.reciprocal %57 {approx = true} : vector<1x1xf32> -> vector<1x1xf32>
    %59 = arith.mulf %57, %58 : vector<1x1xf32>
    %cst_42 = arith.constant 2.000000e+00 : f32
    %60 = vector.broadcast %cst_42 : f32 to vector<1x1xf32>
    %61 = arith.subf %60, %59 : vector<1x1xf32>
    %62 = arith.mulf %58, %61 : vector<1x1xf32>
    %63 = vector.broadcast %62 : vector<1x1xf32> to vector<1x128xf32>
    %64 = arith.mulf %55, %63 : vector<1x128xf32>
    %cst_43 = arith.constant 9.99999996E-13 : f32
    %65 = vector.broadcast %cst_43 : f32 to vector<1x128xf32>
    %66 = arith.addf %64, %65 : vector<1x128xf32>
    %67 = math.log %66 : vector<1x128xf32>
    %68 = arith.mulf %64, %67 : vector<1x128xf32>
    %cst_44 = arith.constant dense<0.000000e+00> : vector<1xf32>
    %69 = vector.multi_reduction <add>, %68, %cst_44 [1] : vector<1x128xf32> to vector<1xf32>
    %70 = vector.shape_cast %69 : vector<1xf32> to vector<1x1xf32>
    %cst_45 = arith.constant 0.000000e+00 : f32
    %71 = vector.broadcast %cst_45 : f32 to vector<1x1xf32>
    %72 = arith.subf %71, %70 : vector<1x1xf32>
    %73 = tpu.iota {dimensions = array<i32: 1>} : vector<1x128xi32>
    %c8_i32 = arith.constant 8 : i32
    %74 = vector.broadcast %c8_i32 : i32 to vector<1x128xi32>
    %75 = arith.cmpi eq, %73, %74 : vector<1x128xi32>
    %76 = arith.select %75, %44, %64 : vector<1x128xi1>, vector<1x128xf32>
    %c9_i32 = arith.constant 9 : i32
    %77 = vector.broadcast %c9_i32 : i32 to vector<1x128xi32>
    %78 = arith.cmpi eq, %73, %77 : vector<1x128xi32>
    %79 = vector.shape_cast %72 : vector<1x1xf32> to vector<1x1xf32>
    %80 = vector.broadcast %79 : vector<1x1xf32> to vector<1x128xf32>
    %81 = arith.select %78, %80, %76 : vector<1x128xi1>, vector<1x128xf32>
    %c0_46 = arith.constant 0 : index
    %c0_47 = arith.constant 0 : index
    %c0_48 = arith.constant 0 : index
    %82 = vector.load %arg14[%c0_46, %c0_47, %c0_48] : memref<1x1x128xf32, #tpu.memory_space<vmem>>, vector<1x1x128xf32>
    %83 = vector.shape_cast %82 : vector<1x1x128xf32> to vector<1x128xf32>
    %84 = vector.shape_cast %81 : vector<1x128xf32> to vector<1x1x128xf32>
    tpu.vector_store %arg14[%c0_46, %c0_47, %c0_48], %84 {strides = array<i32>} : memref<1x1x128xf32, #tpu.memory_space<vmem>>, vector<1x1x128xf32>,
    return
  }
  func.func @transform_0(%arg0: i32) -> (i32, i32, i32) {
    %c0_i32 = arith.constant 0 : i32
    %c0_i32_0 = arith.constant 0 : i32
    %c0_i32_1 = arith.constant 0 : i32
    return %arg0, %c0_i32, %c0_i32_0 : i32, i32, i32
  }
  func.func @transform_1(%arg0: i32) -> (i32, i32, i32) {
    %c0_i32 = arith.constant 0 : i32
    %c0_i32_0 = arith.constant 0 : i32
    %c0_i32_1 = arith.constant 0 : i32
    return %arg0, %c0_i32, %c0_i32_0 : i32, i32, i32
  }
  func.func @transform_2(%arg0: i32) -> (i32, i32, i32) {
    %c0_i32 = arith.constant 0 : i32
    %c0_i32_0 = arith.constant 0 : i32
    %c0_i32_1 = arith.constant 0 : i32
    return %arg0, %c0_i32, %c0_i32_0 : i32, i32, i32
  }
  func.func @transform_3(%arg0: i32) -> (i32, i32, i32) {
    %c0_i32 = arith.constant 0 : i32
    %c0_i32_0 = arith.constant 0 : i32
    %c0_i32_1 = arith.constant 0 : i32
    return %arg0, %c0_i32, %c0_i32_0 : i32, i32, i32
  }
  func.func @transform_4(%arg0: i32) -> (i32, i32) {
    %c0_i32 = arith.constant 0 : i32
    %c0_i32_0 = arith.constant 0 : i32
    %c0_i32_1 = arith.constant 0 : i32
    return %c0_i32, %c0_i32_0 : i32, i32
  }
  func.func @transform_5(%arg0: i32) -> (i32, i32) {
    %c0_i32 = arith.constant 0 : i32
    %c0_i32_0 = arith.constant 0 : i32
    %c0_i32_1 = arith.constant 0 : i32
    return %c0_i32, %c0_i32_0 : i32, i32
  }
  func.func @transform_6(%arg0: i32) -> (i32, i32) {
    %c0_i32 = arith.constant 0 : i32
    %c0_i32_0 = arith.constant 0 : i32
    %c0_i32_1 = arith.constant 0 : i32
    return %c0_i32, %c0_i32_0 : i32, i32
  }
  func.func @transform_7(%arg0: i32) -> (i32, i32) {
    %c0_i32 = arith.constant 0 : i32
    %c0_i32_0 = arith.constant 0 : i32
    %c0_i32_1 = arith.constant 0 : i32
    return %c0_i32, %c0_i32_0 : i32, i32
  }
  func.func @transform_8(%arg0: i32) -> (i32, i32) {
    %c0_i32 = arith.constant 0 : i32
    %c0_i32_0 = arith.constant 0 : i32
    %c0_i32_1 = arith.constant 0 : i32
    return %c0_i32, %c0_i32_0 : i32, i32
  }
  func.func @transform_9(%arg0: i32) -> (i32, i32) {
    %c0_i32 = arith.constant 0 : i32
    %c0_i32_0 = arith.constant 0 : i32
    %c0_i32_1 = arith.constant 0 : i32
    return %c0_i32, %c0_i32_0 : i32, i32
  }
  func.func @transform_10(%arg0: i32) -> (i32, i32) {
    %c0_i32 = arith.constant 0 : i32
    %c0_i32_0 = arith.constant 0 : i32
    %c0_i32_1 = arith.constant 0 : i32
    return %c0_i32, %c0_i32_0 : i32, i32
  }
  func.func @transform_11(%arg0: i32) -> (i32, i32) {
    %c0_i32 = arith.constant 0 : i32
    %c0_i32_0 = arith.constant 0 : i32
    %c0_i32_1 = arith.constant 0 : i32
    return %c0_i32, %c0_i32_0 : i32, i32
  }
  func.func @transform_12(%arg0: i32) -> (i32, i32) {
    %c0_i32 = arith.constant 0 : i32
    %c0_i32_0 = arith.constant 0 : i32
    %c0_i32_1 = arith.constant 0 : i32
    return %c0_i32, %c0_i32_0 : i32, i32
  }
  func.func @transform_13(%arg0: i32) -> (i32, i32, i32) {
    %c0_i32 = arith.constant 0 : i32
    %c0_i32_0 = arith.constant 0 : i32
    %c0_i32_1 = arith.constant 0 : i32
    return %arg0, %c0_i32, %c0_i32_0 : i32, i32, i32
  }
}

</mosaic_0001>

<bundles_post_ra>
// kernel: actor_critic_evaluate.1
= control target key start
LH: loop header
LB: loop body
LE: loop exit
PB: predicated region body
PF: predicated region fallthrough
CT: control target
= control target key end

     0   :  { %s1338_s25 = smov 0   ;;  %s1452_s0 = inlined_call_operand.vmem [shape: f32[2,64,4], index: 0, kind: input, shape index: {}]   ;;  %s1453_s1 = inlined_call_operand.vmem [shape: f32[2,16,4], index: 1, kind: input, shape index: {}]   ;;  %s1454_s2 = inlined_call_operand.vmem [shape: f32[2,1,8], index: 2, kind: input, shape index: {}]   ;;  %s1455_s3 = inlined_call_operand.vmem [shape: f32[2,1,128], index: 3, kind: input, shape index: {}]   ;;  %s1456_s4 = inlined_call_operand.vmem [shape: f32[4,16], index: 4, kind: input, shape index: {}]   ;;  %s1457_s5 = inlined_call_operand.vmem [shape: f32[4,16], index: 5, kind: input, shape index: {}]   ;;  %s1458_s6 = inlined_call_operand.vmem [shape: f32[1,16], index: 6, kind: input, shape index: {}]   ;;  %s1459_s7 = inlined_call_operand.vmem [shape: f32[8,32], index: 7, kind: input, shape index: {}]   ;;  %s1460_s8 = inlined_call_operand.vmem [shape: f32[1,32], index: 8, kind: input, shape index: {}]   ;;  %s1461_s9 = inlined_call_operand.vmem [shape: f32[32,64], index: 9, kind: input, shape index: {}]   ;;  %s1462_s10 = inlined_call_operand.vmem [shape: f32[1,64], index: 10, kind: input, shape index: {}]   ;;  %s1463_s11 = inlined_call_operand.vmem [shape: f32[64,128], index: 11, kind: input, shape index: {}]   ;;  %s1464_s12 = inlined_call_operand.vmem [shape: f32[1,128], index: 12, kind: input, shape index: {}]   ;;  %s1465_s13 = inlined_call_operand.vmem [shape: f32[2,1,128], index: 13, kind: output, shape index: {}]  }
   0x1 LB: > { %s1109_s26 = sadd.s32 4294967295, %s1262_s25   ;;  %p1113_p0 = scmp.ge.s32.totalorder %s1262_s25, 1  ;;  %s1262_s25 = sphi %s1338_s25, %s23_s25  }
   0x2   : > { %p413_p1 = scmp.lt.s32.totalorder %s1262_s25, 3 }
   0x4   : > { %p414_p2 = pnand %p1113_p0, %p413_p1 }
   0x5   : > { %vm510_vm0 = vcmask (!%p414_p2), 1043456   ;;  %v589_v0 = vld [vmem:[%s1457_s5] sm:$0xf] (!%p414_p2)  ;;  %p466_p3 = scmp.lt.s32.totalorder (!%p414_p2), %s1109_s26, 1  ;;  %vm503_vm1 = vcmask (!%p414_p2), 31744   ;;  %v1264_v2 = vmov (!%p414_p2), 0.0  }
   0x6   : > { %417 = sbr.rel (%p414_p2) target bundleno = 1301 (0x515), region = 72  ;;  %1171 = vmatprep.subr.msk.mxu1 (!%p414_p2), %vm510_vm0, %v589_v0  ;;  %v495_v1 = vld [vmem:[%s1456_s4] sm:$0xf] (!%p414_p2)  ;;  %vm1265_vm2 = vmmov (!%p414_p2), 0   ;;  %vm759_vm3 = vcmask (!%p414_p2), 64512   ;;  %v837_v16 = vld [vmem:[%s1461_s9 + $0x8] sm:$0xff] (!%p414_p2) }
   0x7   : > { %1172 = vmatpush3.msk.msra.mxu1 (!%p414_p2), %vm510_vm0, %v589_v0  ;;  %1166 = vmatprep.subr.msk.mxu0 (!%p414_p2), %vm510_vm0, %v495_v1  ;;  %v758_v8 = vld [vmem:[%s1459_s7] sm:$0xff] (!%p414_p2)  ;;  %v1266_v17 = vmov (!%p414_p2), 0.0|0.0   ;;  %vm732_vm4 = vcmask (!%p414_p2), 130048   ;;  %v838_v51 = vld [vmem:[%s1461_s9 + $0x10] sm:$0xff] (!%p414_p2)  ;;  %v839_v52 = vld [vmem:[%s1461_s9 + $0x18] sm:$0xff] (!%p414_p2)  ;;  %s1267_s19 = smov (!%p414_p2), 16  }
   0x8   : > { %1167 = vmatpush3.msk.msra.mxu0 (!%p414_p2), %vm510_vm0, %v495_v1  ;;  %v836_v15 = vld [vmem:[%s1461_s9] sm:$0xff] (!%p414_p2)  ;;  %1226 = vmatprep.subr.bf16.mxu1 (!%p414_p2), %v1266_v17  ;;  %v1224_v53 = vpack.c.bf16 (!%p414_p2), %v839_v52, %v838_v51  ;;  %v917_v58 = vld [vmem:[%s1463_s11 + $0x8] sm:$0xff] (!%p414_p2)  ;;  %v918_v59 = vld [vmem:[%s1463_s11 + $0x10] sm:$0xff] (!%p414_p2)  ;;  %vm841_vm5 = vcmask (!%p414_p2), 261120   ;;  %vm925_vm6 = vcmask (!%p414_p2), 523264   ;;  %vm1002_vm8 = vcmask (!%p414_p2), 1040384  }
   0x9   : > { %1185 = vmatprep.subr.mxu0 (!%p414_p2), %v1264_v2  ;;  %v1221_v18 = vpack.c.bf16 (!%p414_p2), %v837_v16, %v836_v15  ;;  %v1118_v30 = vld [vmem:[%s1458_s6] ss:$0 sm:$0xff] (!%p414_p2)  ;;  %v919_v61 = vld [vmem:[%s1463_s11 + $0x18] sm:$0xff] (!%p414_p2)  ;;  %v922_v16 = vld [vmem:[%s1463_s11 + $0x30] sm:$0xff] (!%p414_p2) }
   0xa   : > { %v916_v57 = vld [vmem:[%s1463_s11] sm:$0xff] (!%p414_p2)  ;;  %v1230_v63 = vpack.c.bf16 (!%p414_p2), %v919_v61, %v918_v59 }
   0xb   : > { %v1227_v60 = vpack.c.bf16 (!%p414_p2), %v917_v58, %v916_v57  ;;  %v920_v1 = vld [vmem:[%s1463_s11 + $0x20] sm:$0xff] (!%p414_p2) }
   0xd   : > { %s1467_s26 = smov (!%p466_p3, %s1109_s26), 1 }
   0xe   : > { %s1136_s14 = sshll.u32 %s1467_s26, 6  ;;  %s1137_s15 = sshll.u32 %s1467_s26, 4 }
   0xf   : > { %s470_s18 = scalar_lea.vmem %s1452_s0, %s1136_s14  ;;  %s475_s21 = scalar_lea.vmem %s1453_s1, %s1137_s15 }
  0x10   : > { %v487_v3 = vld [vmem:[%s470_s18] sm:$0xff]  ;;  %v488_v4 = vld [vmem:[%s470_s18 + $0x8] sm:$0xff]  ;;  %v489_v5 = vld [vmem:[%s470_s18 + $0x10] sm:$0xff]  ;;  %s478_s28 = scalar_lea.vmem %s1454_s2, %s1467_s26  ;;  %s481_s15 = scalar_lea.vmem %s1455_s3, %s1467_s26 }
  0x11   : > { %1173 = vmatprep.mubr.msk.f32.mxu1 %vm503_vm1, %v487_v3  ;;  %v485_v6 = vld [vmem:[%s475_s21] sm:$0xff]  ;;  %v486_v7 = vld [vmem:[%s475_s21 + $0x8] sm:$0xff]  ;;  %v490_v9 = vld [vmem:[%s470_s18 + $0x18] sm:$0xff]  ;;  %s484_s20 = scalar_lea.vmem %s1465_s13, %s1467_s26 }
  0x12   : > { %1174 = vmatmul.mubr.msk.f32.vlgmr.msra.gmra.mrb[0].mxu1 %vm503_vm1, %v488_v4  ;;  %1168 = vmatprep.mubr.msk.f32.mxu0 %vm503_vm1, %v485_v6  ;;  %v491_v10 = vld [vmem:[%s470_s18 + $0x20] sm:$0xff]  ;;  %v492_v12 = vld [vmem:[%s470_s18 + $0x28] sm:$0xff]  ;;  %v493_v13 = vld [vmem:[%s470_s18 + $0x30] sm:$0xff] }
  0x13   : > { %1176 = vmatprep.mubr.msk.f32.mxu1 %vm503_vm1, %v489_v5  ;;  %1169 = vmatmul.mubr.msk.f32.vlgmr.msra.gmra.mrb[0].mxu0 %vm503_vm1, %v486_v7  ;;  %v757_v11 = vld [vmem:[%s478_s28] sm:$0x1]  ;;  %v494_v14 = vld [vmem:[%s470_s18 + $0x38] sm:$0xff] }
  0x14   : > { %1186 = vmatpush3.msra.mxu0 %v758_v8  ;;  %1187 = vmatprep.mubr.msk.f32.mxu0 %vm1265_vm2, %v1264_v2 }
  0x15   : > { %1220 = vmatprep.subr.bf16.mxu0 %v1266_v17  ;;  %1228 = vmatpush3.bf16.msra.mxu1 %v1227_v60 }
  0x16   : > { %1177 = vmatmul.mubr.msk.f32.gmra.mrb[2].mxu1 %vm503_vm1, %v490_v9  ;;  %1229 = vmatprep.subr.bf16.mxu1 %v1266_v17 }
  0x17   : > { %1179 = vmatprep.mubr.msk.f32.mxu1 %vm503_vm1, %v491_v10  ;;  %1188 = vmatmul.mubr.msk.f32.vlgmr.msra.gmra.mrb[2].mxu0 %vm759_vm3, %v757_v11 }
  0x18   : > { %1198 = vmatprep.mubr.msk.f32.mxu0 %vm1265_vm2, %v1264_v2  ;;  %1222 = vmatpush3.bf16.msra.mxu0 %v1221_v18 }
  0x19   : > { %1223 = vmatprep.subr.bf16.mxu0 %v1266_v17  ;;  %1231 = vmatpush3.bf16.msra.mxu1 %v1230_v63 }
  0x1a   : > { %1180 = vmatmul.mubr.msk.f32.gmra.mrb[4].mxu1 %vm503_vm1, %v492_v12  ;;  %1232 = vmatprep.subr.bf16.mxu1 %v1266_v17  ;;  %v834_v12 = vld [vmem:[%s1460_s8] sm:$0x1] }
  0x1b   : > { %1182 = vmatprep.mubr.msk.f32.mxu1 %vm503_vm1, %v493_v13 }
  0x1c   : > { %1225 = vmatpush3.bf16.msra.mxu0 %v1224_v53 }
  0x1e   : > { %1183 = vmatmul.mubr.msk.f32.gmra.mrb[6].mxu1 %vm503_vm1, %v494_v14 }
  0x1f   : > { %1217 = vmatprep.mubr.msk.f32.mxu1 %vm1265_vm2, %v1264_v2  ;;  %v921_v2 = vld [vmem:[%s1463_s11 + $0x28] sm:$0xff] }
  0x20   : > { %v1233_v4 = vpack.c.bf16 %v921_v2, %v920_v1 }
  0x22   : > { %1234 = vmatpush3.bf16.msra.mxu1 %v1233_v4 }
  0x23   : > { %1235 = vmatprep.subr.bf16.mxu1 %v1266_v17  ;;  %v923_v17 = vld [vmem:[%s1463_s11 + $0x38] sm:$0xff] }
  0x24   : > { %v1236_v18 = vpack.c.bf16 %v923_v17, %v922_v16 }
  0x26   : > { %1237 = vmatpush3.bf16.msra.mxu1 %v1236_v18 }
  0xe5   : > { %v1175_v19 = vpop.f32.mrb[0].mxu1 }
  0xe6   : > { %v683_v20 = vpop.f32.mrb[1].mxu1  ;;  %v1170_v21 = vpop.f32.mrb[0].mxu0 }
  0xe7   : > { %v580_v22 = vpop.f32.mrb[1].mxu0  ;;  %v586_v34 = vadd.f32 %v1170_v21, %v1118_v30 }
  0xe8   : > { %v581_v35 = vadd.f32 %v1118_v30, %v580_v22 }
  0xe9   : > { %v1178_v23 = vpop.f32.mrb[2].mxu1 }
  0xea   : > { %v723_v24 = vmax.f32 %v1175_v19, %v1178_v23  ;;  %v693_v25 = vpop.f32.mrb[3].mxu1  ;;  %v829_v27 = vpop.f32.mrb[2].mxu0  ;;  %v840_v19 = vld [vmem:[%s1462_s10] sm:$0x1] }
  0xeb   : > { %v722_v26 = vmax.f32 %v683_v20, %v693_v25  ;;  %v1189_v28 = vpop.f32.mrb[3].mxu0  ;;  %v924_v25 = vld [vmem:[%s1464_s12] sm:$0x1] }
  0xed   : > { %v1181_v29 = vpop.f32.mrb[4].mxu1 }
  0xee   : > { %v725_v31 = vmax.f32 %v723_v24, %v1181_v29  ;;  %v703_v32 = vpop.f32.mrb[5].mxu1  ;;  %v999_v24 = vld [vmem:[%s481_s15] sm:$0x1] }
  0xef   : > { %v724_v33 = vmax.f32 %v722_v26, %v703_v32  ;;  %vm1000_vm7 = vcmp.gt.f32.partialorder %v999_v24, 0.0 }
  0xf1   : > { %v1184_v36 = vpop.f32.mrb[6].mxu1 }
  0xf2   : > { %v727_v37 = vmax.f32 %v725_v31, %v1184_v36  ;;  %v713_v38 = vpop.f32.mrb[7].mxu1 }
  0xf3   : > { %v726_v39 = vmax.f32 %v724_v33, %v713_v38 }
  0xf4   : > { %v729_v40 = vadd.f32 %v727_v37, %v586_v34 }
  0xf5   : > { %v728_v41 = vadd.f32 %v726_v39, %v581_v35 }
  0xf6   : > { %v731_v42 = vmax.f32 %v729_v40, 0.0 }
  0xf7   : > { %v730_v43 = vmax.f32 %v728_v41, 0.0 }
  0xf8   : > { %v734_v44 = vsel %vm732_vm4, %v731_v42, -inf  ;;  %v743_v45 = vsel %vm732_vm4, %v731_v42, 0.0 }
  0xf9   : > { %v733_v46 = vsel %vm732_vm4, %v730_v43, -inf  ;;  %v742_v47 = vsel %vm732_vm4, %v730_v43, 0.0 }
  0xfa   : > { %v735_v48 = vmax.f32 %v733_v46, %v734_v44  ;;  %v744_v49 = vadd.f32 %v743_v45, %v742_v47  ;;  %v1025_v47 = vlaneseq }
  0xfc   : > { %v745_v50 = vrot.slane %v744_v49, 4  ;;  %v736_v5 = vrot.slane %v735_v48, 4 }
  0xfe   : > { %v746_v54 = vadd.f32 %v745_v50, %v744_v49  ;;  %v737_v6 = vmax.f32 %v735_v48, %v736_v5  ;;  %v1026_v48 = vand.u32 127, %v1025_v47 }
 0x100   : > { %v747_v55 = vrot.slane %v746_v54, 2  ;;  %v738_v7 = vrot.slane %v737_v6, 2  ;;  %vm1027_vm9 = vcmp.eq.s32.totalorder %v1026_v48, 8  ;;  %vm1029_vm10 = vcmp.eq.s32.totalorder %v1026_v48, 9 }
 0x102   : > { %v748_v56 = vadd.f32 %v747_v55, %v746_v54  ;;  %v739_v8 = vmax.f32 %v737_v6, %v738_v7 }
 0x104   : > { %v749_v62 = vrot.slane %v748_v56, 1  ;;  %v740_v9 = vrot.slane %v739_v8, 1 }
 0x106   : > { %v750_v0 = vadd.f32 %v749_v62, %v748_v56  ;;  %v741_v10 = vmax.f32 %v739_v8, %v740_v9 }
 0x108   : > { %v751_v3 = vmul.f32 0.0625, %v750_v0 }
 0x10a   : > { %753 = vrot.lane.b32.xlu0 %v751_v3, %s1267_s19 }
 0x17c   : > { %v754_v11 = vpop.permute.xlu0 %753 }
 0x17d   : > { %v756_v13 = vsel %vm732_vm4, %v741_v10, %v754_v11 }
 0x17e   : > { %v833_v14 = vadd.f32 %v829_v27, %v756_v13 }
 0x180   : > { %v835_v15 = vadd.f32 %v834_v12, %v833_v14 }
 0x182   : > { %1199 = vmatmul.mubr.msk.f32.vlgmr.msra.gmra.mrb[4].mxu0 %vm841_vm5, %v835_v15 }
 0x255   : > { %v911_v20 = vpop.f32.mrb[4].mxu0 }
 0x256   : > { %v912_v21 = vadd.f32 %v911_v20, %v840_v19  ;;  %v1200_v22 = vpop.f32.mrb[5].mxu0 }
 0x258   : > { %v915_v23 = vmax.f32 %v912_v21, 0.0 }
 0x25a   : > { %1218 = vmatmul.mubr.msk.f32.vlgmr.msra.gmra.mrb[8].mxu1 %vm925_vm6, %v915_v23 }
 0x32d   : > { %v995_v26 = vpop.f32.mrb[8].mxu1 }
 0x32e   : > { %v996_v27 = vadd.f32 %v995_v26, %v924_v25  ;;  %v1219_v28 = vpop.f32.mrb[9].mxu1 }
 0x330   : > { %v1001_v29 = vsel %vm1000_vm7, %v996_v27, -1e+09 }
 0x331   : > { %v1003_v30 = vsel %vm1002_vm8, %v1001_v29, -inf }
 0x332   : > { %1004 = vmax.xlane.f32.xlu0 %v1003_v30 }
 0x3bf   : > { %v1005_v31 = vpop.xlane.xlu0 %1004 }
 0x3c0   : > { %v1006_v32 = vsub.f32 %v1001_v29, %v1005_v31 }
 0x3c2   : > { %v1007_v33 = vmul.f32 1.442695, %v1006_v32 }
 0x3c4   : > { %1250 = vpow2.f32 %v1007_v33 }
 0x3ce   : > { %v1251_v34 = vpop.eup %1250 }
 0x3cf   : > { %v1009_v35 = vsel %vm1002_vm8, %v1251_v34, 0.0 }
 0x3d0   : > { %1010 = vadd.xlane.f32.xlu1 %v1009_v35 }
 0x45d   : > { %v1011_v36 = vpop.xlane.xlu1 %1010 }
 0x45e   : > { %1252 = vrcp.f32 %v1011_v36 }
 0x468   : > { %v1253_v37 = vpop.eup %1252 }
 0x469   : > { %v1013_v38 = vmul.f32 %v1253_v37, %v1011_v36 }
 0x46b   : > { %v1014_v39 = vsub.f32 2.0, %v1013_v38 }
 0x46d   : > { %v1015_v40 = vmul.f32 %v1253_v37, %v1014_v39 }
 0x46f   : > { %v1016_v41 = vmul.f32 %v1251_v34, %v1015_v40 }
 0x471   : > { %v1017_v42 = vadd.f32 1e-12, %v1016_v41  ;;  %v1028_v51 = vsel %vm1027_vm9, %v996_v27, %v1016_v41 }
 0x473   : > { %1254 = vlog2.f32 %v1017_v42 }
 0x47d   : > { %v1255_v43 = vpop.eup %1254 }
 0x47e   : > { %v1019_v44 = vmul.f32 0.6931472, %v1255_v43 }
 0x480   : > { %v1020_v45 = vmul.f32 %v1019_v44, %v1016_v41 }
 0x482   : > { %v1021_v46 = vsel %vm1002_vm8, %v1020_v45, 0.0 }
 0x483   : > { %1022 = vadd.xlane.f32.xlu1 %v1021_v46 }
 0x510   : > { %v1023_v49 = vpop.xlane.xlu1 %1022 }
 0x511   : > { %v1024_v50 = vsub.f32 0.0, %v1023_v49 }
 0x513   : > { %v1030_v52 = vsel %vm1029_vm10, %v1024_v50, %v1028_v51 }
 0x514   : > { %1031 = vst [vmem:[%s484_s20] sm:$0x1] %v1030_v52 }
 0x515 PF: > { %s23_s25 = sadd.s32 1, %s1262_s25  }
 0x516   : > { %p20_p4 = scmp.ge.s32.totalorder %s23_s25, 4  }
 0x518   :  { %22 = sbr.rel (!%p20_p4) target bundleno = 1 (0x1), region = 111 }

</bundles_post_ra>
